<compile_context>
chip_gen: v7x
topology: tpu7x:2x2x1
jax: 0.10.0
libtpu: 0.0.40
codegen_flags: <defaults>
</compile_context>

<pallas_src>
import functools
import math

import jax
import jax.numpy as jnp
from jax.experimental import pallas as pl
from jax.experimental.pallas import tpu as pltpu

LN_EPS = 1e-5


# --------------------------- generation-aware sizing ---------------------------

def _vmem_capacity_bytes():
    try:
        return int(pltpu.get_tpu_info().vmem_capacity_bytes)
    except Exception:
        return 64 * 1024 * 1024            # conservative (v7x-sized) fallback


_VMEM_CAP = _vmem_capacity_bytes()
# Scoped VMEM limit: ~3/4 of physical (-> ~96 MiB on v5e/v6e, ~48 MiB on v7x).
_VMEM_LIMIT = min((_VMEM_CAP * 3) // 4, 100 * 1024 * 1024)
_BIG_VMEM = _VMEM_CAP >= 100 * 1024 * 1024

# Matmul tile targets (per-call shrink via _fit_matmul_tiles if VMEM-tight).
if _BIG_VMEM:                               # v5e / v6e (128 MiB VMEM)
    _TM, _TN, _TK = 2048, 1024, 512
else:                                       # v7x (64 MiB VMEM per TensorCore)
    _TM, _TN, _TK = 1024, 1024, 512
_TM_VOCAB = 2048                            # big row tile for tied-embedding proj.
_TQ, _TKV = 512, 512                        # flash-attention tiles


def _tile(dim, target, align):
    """Largest tile <= target that divides `dim` and is a multiple of `align`;
    falls back to the full dimension (always legal for BlockSpec)."""
    if dim <= target:
        return dim
    t = (min(target, dim) // align) * align
    while t >= align:
        if dim % t == 0:
            return t
        t -= align
    return dim


def _fit_matmul_tiles(M, N, K, *, out_bytes, tm_target, tn_target, tk_target):
    """Pick (tm, tn, tk) so the f32 accumulator + double-buffered tiles fit VMEM."""
    budget = (_VMEM_LIMIT * 4) // 5
    tm_t, tn_t, tk_t = tm_target, tn_target, tk_target
    while True:
        tm = _tile(M, tm_t, 16)
        tn = _tile(N, tn_t, 128)
        tk = _tile(K, tk_t, 128)
        est = (4 * tm * tn                      # f32 accumulator
               + 4 * tm * tk + 4 * tk * tn      # double-buffered bf16 x / w tiles
               + 2 * out_bytes * tm * tn)       # double-buffered output tiles
        if est <= budget:
            return tm, tn, tk
        if tm_t > 256 and tm_t >= tn_t and tm_t >= tk_t:
            tm_t //= 2
        elif tn_t > 256 and tn_t >= tk_t:
            tn_t //= 2
        elif tk_t > 256:
            tk_t //= 2
        else:
            return tm, tn, tk                   # best effort


def _params(*sem):
    return pltpu.CompilerParams(dimension_semantics=sem,
                                vmem_limit_bytes=_VMEM_LIMIT)


# ----------------------------- in-kernel helpers -----------------------------

def _layernorm_f32(x, gamma, beta):
    mu = jnp.mean(x, axis=-1, keepdims=True)
    var = jnp.mean(jnp.square(x - mu), axis=-1, keepdims=True)
    return (x - mu) * jax.lax.rsqrt(var + LN_EPS) * gamma + beta


def _gelu(x):
    # Megatron tanh-approximation GELU (f32, VPU/EUP).
    return 0.5 * x * (1.0 + jnp.tanh(0.7978845608028654 * x * (1.0 + 0.044715 * x * x)))


# ------------------------------- Pallas kernels -------------------------------

def _layernorm_kernel(x_ref, g_ref, b_ref, out_ref):
    x = x_ref[...].astype(jnp.float32)
    out_ref[...] = _layernorm_f32(x, g_ref[...], b_ref[...]).astype(out_ref.dtype)


def _matmul_kernel(activation, has_bias, x_ref, w_ref, *rest):
    """Tiled y = act(x @ w [+ b]); f32 VMEM accumulator over K."""
    if has_bias:
        b_ref, out_ref, acc_ref = rest
    else:
        out_ref, acc_ref = rest
    k = pl.program_id(2)

    @pl.when(k == 0)
    def _():
        acc_ref[...] = jnp.zeros(acc_ref.shape, jnp.float32)

    x = x_ref[...].astype(jnp.bfloat16)
    acc_ref[...] += jnp.dot(x, w_ref[...], preferred_element_type=jnp.float32)

    @pl.when(k == pl.num_programs(2) - 1)
    def _():
        y = acc_ref[...]
        if has_bias:
            y = y + b_ref[...].astype(jnp.float32)
        if activation == "gelu":
            y = _gelu(y)
        out_ref[...] = y.astype(out_ref.dtype)


def _matmul_res_ln_kernel(x_ref, w_ref, b_ref, r_ref, g_ref, bb_ref,
                          y_ref, ln_ref, acc_ref):
    """Tiled y = x @ w + b + residual, plus ln = LayerNorm(y) (fused epilogue).

    Requires tn == N (full output row) so LN sees the whole hidden dim.
    """
    k = pl.program_id(1)

    @pl.when(k == 0)
    def _():
        acc_ref[...] = jnp.zeros(acc_ref.shape, jnp.float32)

    x = x_ref[...].astype(jnp.bfloat16)
    acc_ref[...] += jnp.dot(x, w_ref[...], preferred_element_type=jnp.float32)

    @pl.when(k == pl.num_programs(1) - 1)
    def _():
        y = acc_ref[...] + b_ref[...].astype(jnp.float32) + r_ref[...].astype(jnp.float32)
        y_ref[...] = y.astype(y_ref.dtype)
        ln_ref[...] = _layernorm_f32(y, g_ref[...], bb_ref[...]).astype(ln_ref.dtype)


def _flash_attn_kernel(scale, causal, tq, tkv, *refs):
    """Flash-style attention over KV tiles (online softmax).

    causal=True: mask generated in-kernel (iota), fully-masked tiles skipped.
    causal=False: a binary {0,1} mask tile is DMA'd and applied with one where.
    """
    if causal:
        q_ref, k_ref, v_ref, o_ref, m_sc, l_sc, acc_sc = refs
        mask_ref = None
    else:
        q_ref, k_ref, v_ref, mask_ref, o_ref, m_sc, l_sc, acc_sc = refs

    qi = pl.program_id(2)
    ki = pl.program_id(3)

    @pl.when(ki == 0)
    def _():
        m_sc[...] = jnp.full(m_sc.shape, -jnp.inf, jnp.float32)
        l_sc[...] = jnp.zeros(l_sc.shape, jnp.float32)
        acc_sc[...] = jnp.zeros(acc_sc.shape, jnp.float32)

    def compute():
        # Fold 1/sqrt(hd) into q (tq*hd mul instead of tq*tkv mul on the scores).
        q = (q_ref[...].astype(jnp.float32) * scale).astype(jnp.bfloat16)
        k = k_ref[...]
        v = v_ref[...]
        s = jax.lax.dot_general(q, k, (((1,), (1,)), ((), ())),
                                preferred_element_type=jnp.float32)
        if causal:
            row = qi * tq + jax.lax.broadcasted_iota(jnp.int32, (tq, tkv), 0)
            col = ki * tkv + jax.lax.broadcasted_iota(jnp.int32, (tq, tkv), 1)
            s = jnp.where(col <= row, s, -10000.0)
        else:
            # Binary Megatron mask: s*m - 1e4*(1-m)  ==  where(m, s, -1e4).
            s = jnp.where(mask_ref[...] > 0.5, s, -10000.0)

        m_prev = m_sc[...]
        m_new = jnp.maximum(m_prev, jnp.max(s, axis=-1, keepdims=True))
        alpha = jnp.exp(m_prev - m_new)
        p = jnp.exp(s - m_new)
        l_sc[...] = alpha * l_sc[...] + jnp.sum(p, axis=-1, keepdims=True)
        acc_sc[...] = alpha * acc_sc[...] + jnp.dot(
            p.astype(jnp.bfloat16), v, preferred_element_type=jnp.float32)
        m_sc[...] = m_new

    if causal:
        # Skip KV tiles that lie entirely in the masked future.
        @pl.when(ki * tkv <= qi * tq + (tq - 1))
        def _():
            compute()
    else:
        compute()
    # TODO(synk): attention-dropout omitted (inference semantics).

    @pl.when(ki == pl.num_programs(3) - 1)
    def _():
        o_ref[...] = (acc_sc[...] / l_sc[...]).astype(o_ref.dtype)


# --------------------------------- wrappers -----------------------------------

def layernorm(x, gamma, beta, out_dtype=jnp.bfloat16):
    M, H = x.shape
    tm = _tile(M, 512, 16)
    return pl.pallas_call(
        _layernorm_kernel,
        out_shape=jax.ShapeDtypeStruct((M, H), out_dtype),
        grid=(M // tm,),
        in_specs=[pl.BlockSpec((tm, H), lambda i: (i, 0)),
                  pl.BlockSpec((1, H), lambda i: (0, 0)),
                  pl.BlockSpec((1, H), lambda i: (0, 0))],
        out_specs=pl.BlockSpec((tm, H), lambda i: (i, 0)),
        compiler_params=_params("parallel"),
    )(x, gamma, beta)


def matmul(x, w, b=None, *, activation=None, out_dtype=jnp.bfloat16,
           tm_target=None, tn_target=None, tk_target=None):
    """Tiled y = act(x @ w [+ b]); f32 accumulation, bf16 MXU inputs."""
    M, K = x.shape
    Kw, N = w.shape
    assert K == Kw
    tm, tn, tk = _fit_matmul_tiles(
        M, N, K, out_bytes=jnp.dtype(out_dtype).itemsize,
        tm_target=tm_target if tm_target is not None else _TM,
        tn_target=tn_target if tn_target is not None else _TN,
        tk_target=tk_target if tk_target is not None else _TK)
    grid = (M // tm, N // tn, K // tk)

    in_specs = [pl.BlockSpec((tm, tk), lambda i, j, k: (i, k)),
                pl.BlockSpec((tk, tn), lambda i, j, k: (k, j))]
    args = [x, w]
    if b is not None:
        in_specs.append(pl.BlockSpec((1, tn), lambda i, j, k: (0, j)))
        args.append(b)

    kernel = functools.partial(_matmul_kernel, activation, b is not None)
    return pl.pallas_call(
        kernel,
        out_shape=jax.ShapeDtypeStruct((M, N), out_dtype),
        grid=grid,
        in_specs=in_specs,
        out_specs=pl.BlockSpec((tm, tn), lambda i, j, k: (i, j)),
        scratch_shapes=[pltpu.VMEM((tm, tn), jnp.float32)],
        compiler_params=_params("parallel", "parallel", "arbitrary"),
    )(*args)


def matmul_res_ln(x, w, b, residual, gamma, beta, *, out_dtype=jnp.bfloat16):
    """(y, ln) = (x @ w + b + residual, LayerNorm(y)); LN fused into the epilogue."""
    M, K = x.shape
    Kw, N = w.shape
    assert K == Kw and residual.shape == (M, N)

    tk = _tile(K, _TK, 128)
    budget = (_VMEM_LIMIT * 4) // 5
    # acc(4N) + x dbuf(4tk) + res dbuf(4N) + two bf16 out dbufs(8N) per row; + w dbuf.
    denom = 16 * N + 4 * tk
    tm_cap = max(16, (budget - 4 * tk * N) // denom)
    tm_target = max(16, min(_TM, (tm_cap // 16) * 16))
    tm = _tile(M, tm_target, 16)
    grid = (M // tm, K // tk)

    return pl.pallas_call(
        _matmul_res_ln_kernel,
        out_shape=(jax.ShapeDtypeStruct((M, N), out_dtype),
                   jax.ShapeDtypeStruct((M, N), jnp.bfloat16)),
        grid=grid,
        in_specs=[pl.BlockSpec((tm, tk), lambda i, k: (i, k)),
                  pl.BlockSpec((tk, N), lambda i, k: (k, 0)),
                  pl.BlockSpec((1, N), lambda i, k: (0, 0)),
                  pl.BlockSpec((tm, N), lambda i, k: (i, 0)),
                  pl.BlockSpec((1, N), lambda i, k: (0, 0)),
                  pl.BlockSpec((1, N), lambda i, k: (0, 0))],
        out_specs=(pl.BlockSpec((tm, N), lambda i, k: (i, 0)),
                   pl.BlockSpec((tm, N), lambda i, k: (i, 0))),
        scratch_shapes=[pltpu.VMEM((tm, N), jnp.float32)],
        compiler_params=_params("parallel", "arbitrary"),
    )(x, w, b, residual, gamma, beta)


def _flash_attention_heads(q, k, v, mask, causal, *, scale, tq, tkv):
    """q, k, v: (B, NH, S, hd) bf16 (head-major layout via XLA transposes)."""
    B, NH, S, hd = q.shape
    grid = (B, NH, S // tq, S // tkv)
    in_specs = [pl.BlockSpec((None, None, tq, hd), lambda b, h, qi, ki: (b, h, qi, 0)),
                pl.BlockSpec((None, None, tkv, hd), lambda b, h, qi, ki: (b, h, ki, 0)),
                pl.BlockSpec((None, None, tkv, hd), lambda b, h, qi, ki: (b, h, ki, 0))]
    args = [q, k, v]
    if not causal:
        if mask.shape[0] > 1:
            mspec = pl.BlockSpec((None, tq, tkv), lambda b, h, qi, ki: (b, qi, ki))
        else:
            mspec = pl.BlockSpec((None, tq, tkv), lambda b, h, qi, ki: (0, qi, ki))
        in_specs.append(mspec)
        args.append(mask)

    kernel = functools.partial(_flash_attn_kernel, scale, causal, tq, tkv)
    return pl.pallas_call(
        kernel,
        out_shape=jax.ShapeDtypeStruct((B, NH, S, hd), jnp.bfloat16),
        grid=grid,
        in_specs=in_specs,
        out_specs=pl.BlockSpec((None, None, tq, hd), lambda b, h, qi, ki: (b, h, qi, 0)),
        scratch_shapes=[pltpu.VMEM((tq, 1), jnp.float32),
                        pltpu.VMEM((tq, 1), jnp.float32),
                        pltpu.VMEM((tq, hd), jnp.float32)],
        compiler_params=_params("parallel", "parallel", "parallel", "arbitrary"),
    )(*args)


def _flash_attention_fused(qkv2d, mask, causal, *, B, S, num_heads, head_dim,
                           scale, tq, tkv):
    """Transpose-free attention: q/k/v tiles are indexed directly out of the
    (B*S, 3H) QKV projection and the context is written into (B*S, H).
    Requires head_dim % 128 == 0 (lane-alignment of the hd-wide column blocks)."""
    NH, hd = num_heads, head_dim
    H = NH * hd
    M = B * S
    nq, nkv = S // tq, S // tkv
    grid = (B, NH, nq, nkv)

    in_specs = [
        pl.BlockSpec((tq, hd), lambda b, h, qi, ki: (b * nq + qi, h)),
        pl.BlockSpec((tkv, hd), lambda b, h, qi, ki: (b * nkv + ki, NH + h)),
        pl.BlockSpec((tkv, hd), lambda b, h, qi, ki: (b * nkv + ki, 2 * NH + h)),
    ]
    args = [qkv2d, qkv2d, qkv2d]
    if not causal:
        if mask.shape[0] > 1:
            mspec = pl.BlockSpec((None, tq, tkv), lambda b, h, qi, ki: (b, qi, ki))
        else:
            mspec = pl.BlockSpec((None, tq, tkv), lambda b, h, qi, ki: (0, qi, ki))
        in_specs.append(mspec)
        args.append(mask)

    kernel = functools.partial(_flash_attn_kernel, scale, causal, tq, tkv)
    return pl.pallas_call(
        kernel,
        out_shape=jax.ShapeDtypeStruct((M, H), jnp.bfloat16),
        grid=grid,
        in_specs=in_specs,
        out_specs=pl.BlockSpec((tq, hd), lambda b, h, qi, ki: (b * nq + qi, h)),
        scratch_shapes=[pltpu.VMEM((tq, 1), jnp.float32),
                        pltpu.VMEM((tq, 1), jnp.float32),
                        pltpu.VMEM((tq, hd), jnp.float32)],
        compiler_params=_params("parallel", "parallel", "parallel", "arbitrary"),
    )(*args)


# ----------------------------------- model ------------------------------------

class GPT2ModelPallas:
    """JAX/Pallas port of GPT2Model (single model-parallel partition, inference).

    copy_to_model_parallel_region / gather_from_model_parallel_region are identity
    on a single partition; parallel_output only affects that gather.
    """

    def __init__(self, num_layers, vocab_size, hidden_size, num_attention_heads,
                 max_sequence_length, key, parallel_output=True):
        self.num_layers = num_layers
        self.num_heads = num_attention_heads
        self.hidden = hidden_size
        self.parallel_output = parallel_output
        H = hidden_size
        std = 0.02

        keys = jax.random.split(key, 2 + 4 * max(num_layers, 1))
        ki = iter(keys)

        def normal(k, shape):
            return (std * jax.random.normal(k, shape)).astype(jnp.float32)

        # VocabParallelEmbedding (single partition) + position embeddings.
        self.word_emb = normal(next(ki), (vocab_size, H))            # (V, H) f32
        # Tied-projection table precomputed once (no `.T` per forward), bf16.
        self.word_emb_T = self.word_emb.T.astype(jnp.bfloat16)       # (H, V) bf16
        self.pos_emb = normal(next(ki), (max_sequence_length, H))    # (S_max, H)

        ones = jnp.ones((1, H), jnp.float32)
        zeros = jnp.zeros((1, H), jnp.float32)
        self.layers = []
        for _ in range(num_layers):
            self.layers.append(dict(
                ln1_g=ones, ln1_b=zeros,
                wqkv=normal(next(ki), (H, 3 * H)).astype(jnp.bfloat16),  # [Q|K|V] cols
                bqkv=jnp.zeros((1, 3 * H), jnp.float32),
                wo=normal(next(ki), (H, H)).astype(jnp.bfloat16),
                bo=jnp.zeros((1, H), jnp.float32),
                ln2_g=ones, ln2_b=zeros,
                w1=normal(next(ki), (H, 4 * H)).astype(jnp.bfloat16),
                b1=jnp.zeros((1, 4 * H), jnp.float32),
                w2=normal(next(ki), (4 * H, H)).astype(jnp.bfloat16),
                b2=jnp.zeros((1, H), jnp.float32),
            ))
        self.lnf_g = ones
        self.lnf_b = zeros

    @staticmethod
    def _is_causal(mask3d, S):
        if mask3d.shape[0] != 1:
            return False
        try:
            tri = jnp.tril(jnp.ones((S, S), jnp.float32))
            return bool(jnp.array_equal(mask3d[0], tri))
        except Exception:                      # traced mask -> general path
            return False

    def _attention(self, qkv2d, mask3d, causal, B, S):
        H, NH = self.hidden, self.num_heads
        hd = H // NH
        scale = 1.0 / math.sqrt(hd)
        tq = _tile(S, _TQ, 16)
        tkv = _tile(S, _TKV, 128)
        if hd % 128 == 0:
            # Transpose-free path: blocks indexed straight out of (B*S, 3H).
            return _flash_attention_fused(qkv2d, mask3d, causal, B=B, S=S,
                                          num_heads=NH, head_dim=hd,
                                          scale=scale, tq=tq, tkv=tkv)
        # TODO(synk): for head_dim not a multiple of 128 the lane-alignment rules
        # force head-major layout, so keep the XLA reshape/transpose glue here.
        qkv = qkv2d.reshape(B, S, 3, NH, hd)
        q = jnp.transpose(qkv[:, :, 0], (0, 2, 1, 3))
        k = jnp.transpose(qkv[:, :, 1], (0, 2, 1, 3))
        v = jnp.transpose(qkv[:, :, 2], (0, 2, 1, 3))
        ctx = _flash_attention_heads(q, k, v, mask3d, causal,
                                     scale=scale, tq=tq, tkv=tkv)
        return jnp.transpose(ctx, (0, 2, 1, 3)).reshape(B * S, H)

    def __call__(self, input_ids, position_ids, attention_mask,
                 txt_indices_bool, img_indices_bool, is_sparse, *mems):
        B, S = input_ids.shape
        H = self.hidden
        M = B * S

        # Embedding lookup (glue): words + positions; bf16 residual stream.
        words = jnp.take(self.word_emb, input_ids, axis=0)            # (B, S, H)
        pos = jnp.take(self.pos_emb, position_ids, axis=0)            # (B, S, H)
        x = (words + pos).astype(jnp.bfloat16).reshape(M, H)
        # TODO(synk): embedding/output dropout omitted (inference semantics).
        # TODO(synk): sparse pivot attention (is_sparse, txt/img indices) and
        #             memory (mems) caching are not implemented; dense path only.

        mask3d = attention_mask.astype(jnp.float32).reshape(-1, S, S)
        causal = self._is_causal(mask3d, S)

        # Layer-0 input LayerNorm; all later LNs are fused into the preceding matmul.
        if self.num_layers:
            ln_in = layernorm(x, self.layers[0]["ln1_g"], self.layers[0]["ln1_b"])
        else:
            ln_in = layernorm(x, self.lnf_g, self.lnf_b)

        L = self.num_layers
        for i, p in enumerate(self.layers):
            # --- self-attention block (pre-LN) ---
            qkv = matmul(ln_in, p["wqkv"], p["bqkv"])                  # (M, 3H) bf16
            ctx = self._attention(qkv, mask3d, causal, B, S)           # (M, H) bf16
            # Output projection + residual + next LayerNorm fused in one kernel.
            x, ln2 = matmul_res_ln(ctx, p["wo"], p["bo"], x,
                                   p["ln2_g"], p["ln2_b"])
            # --- MLP block (pre-LN) ---
            ff = matmul(ln2, p["w1"], p["b1"], activation="gelu")      # (M, 4H) bf16
            if i + 1 < L:
                ng, nb = self.layers[i + 1]["ln1_g"], self.layers[i + 1]["ln1_b"]
            else:
                ng, nb = self.lnf_g, self.lnf_b
            x, ln_in = matmul_res_ln(ff, p["w2"], p["b2"], x, ng, nb)

        # ln_in now holds the final LayerNorm(x).  Tied-embedding vocab projection:
        # big row tile, K-resident tk, no synthetic bias, lane-dense V tiles.
        logits2d = matmul(ln_in, self.word_emb_T, None, out_dtype=jnp.float32,
                          tm_target=_TM_VOCAB, tk_target=max(H, _TK))
        logits = logits2d.reshape(B, S, -1)
        # parallel_output: gather across model-parallel ranks is identity here.
        return (logits,)


# ----------------------------------- main --------------------------------------

if __name__ == "__main__":
    B, S, H, NH, V, L = 2, 8, 32, 4, 128, 2

    key = jax.random.PRNGKey(0)
    k_model, k_ids = jax.random.split(key)

    model = GPT2ModelPallas(
        num_layers=L, vocab_size=V, hidden_size=H, num_attention_heads=NH,
        max_sequence_length=S, key=k_model, parallel_output=True)

    input_ids = jax.random.randint(k_ids, (B, S), 0, V, dtype=jnp.int32)
    position_ids = jnp.broadcast_to(jnp.arange(S, dtype=jnp.int32), (B, S))
    attention_mask = jnp.tril(jnp.ones((1, 1, S, S), jnp.float32))  # causal mask
    txt_indices_bool = jnp.ones((B, S), jnp.bool_)
    img_indices_bool = jnp.zeros((B, S), jnp.bool_)
    is_sparse = 0

    outputs = model(input_ids, position_ids, attention_mask,
                    txt_indices_bool, img_indices_bool, is_sparse)
    logits = jax.block_until_ready(outputs[0])

    assert logits.shape == (B, S, V), logits.shape
    assert bool(jnp.all(jnp.isfinite(logits)))
    print("KERNEL_OK")
</pallas_src>

<mosaic_0001>
module attributes {stable_mosaic.version = 11 : i64} {
  func.func @_layernorm_kernel(%arg0: i32, %arg1: memref<16x32xbf16, #tpu.memory_space<vmem>>, %arg2: memref<1x32xf32, #tpu.memory_space<vmem>>, %arg3: memref<1x32xf32, #tpu.memory_space<vmem>>, %arg4: memref<16x32xbf16, #tpu.memory_space<vmem>>) attributes {dimension_semantics = [#tpu.dimension_semantics<parallel>], iteration_bounds = array<i64: 1>, scalar_prefetch = 0 : i64, scratch_operands = 0 : i64, tpu.core_type = #tpu.core_type<tc>, window_params = [{transform_indices = @transform_0, window_bounds = array<i64: 16, 32>}, {pipeline_mode = #tpu.pipeline_mode<synchronous>, transform_indices = @transform_1, window_bounds = array<i64: 1, 32>}, {pipeline_mode = #tpu.pipeline_mode<synchronous>, transform_indices = @transform_2, window_bounds = array<i64: 1, 32>}, {transform_indices = @transform_3, window_bounds = array<i64: 16, 32>}]} {
    %c0 = arith.constant 0 : index
    %c0_0 = arith.constant 0 : index
    %0 = vector.load %arg1[%c0, %c0_0] : memref<16x32xbf16, #tpu.memory_space<vmem>>, vector<16x32xbf16>
    %1 = arith.extf %0 : vector<16x32xbf16> to vector<16x32xf32>
    %c0_1 = arith.constant 0 : index
    %c0_2 = arith.constant 0 : index
    %2 = vector.load %arg2[%c0_1, %c0_2] : memref<1x32xf32, #tpu.memory_space<vmem>>, vector<1x32xf32>
    %c0_3 = arith.constant 0 : index
    %c0_4 = arith.constant 0 : index
    %3 = vector.load %arg3[%c0_3, %c0_4] : memref<1x32xf32, #tpu.memory_space<vmem>>, vector<1x32xf32>
    %cst = arith.constant dense<0.000000e+00> : vector<16xf32>
    %4 = vector.multi_reduction <add>, %1, %cst [1] : vector<16x32xf32> to vector<16xf32>
    %5 = vector.shape_cast %4 : vector<16xf32> to vector<16x1xf32>
    %cst_5 = arith.constant 3.200000e+01 : f32
    %6 = vector.broadcast %cst_5 : f32 to vector<16x1xf32>
    %7 = arith.divf %5, %6 : vector<16x1xf32>
    %8 = vector.broadcast %7 : vector<16x1xf32> to vector<16x32xf32>
    %9 = arith.subf %1, %8 : vector<16x32xf32>
    %10 = arith.mulf %9, %9 : vector<16x32xf32>
    %cst_6 = arith.constant dense<0.000000e+00> : vector<16xf32>
    %11 = vector.multi_reduction <add>, %10, %cst_6 [1] : vector<16x32xf32> to vector<16xf32>
    %12 = vector.shape_cast %11 : vector<16xf32> to vector<16x1xf32>
    %cst_7 = arith.constant 3.200000e+01 : f32
    %13 = vector.broadcast %cst_7 : f32 to vector<16x1xf32>
    %14 = arith.divf %12, %13 : vector<16x1xf32>
    %15 = vector.broadcast %7 : vector<16x1xf32> to vector<16x32xf32>
    %16 = arith.subf %1, %15 : vector<16x32xf32>
    %cst_8 = arith.constant 9.99999974E-6 : f32
    %17 = vector.broadcast %cst_8 : f32 to vector<16x1xf32>
    %18 = arith.addf %14, %17 : vector<16x1xf32>
    %19 = math.rsqrt %18 : vector<16x1xf32>
    %20 = vector.broadcast %19 : vector<16x1xf32> to vector<16x32xf32>
    %21 = arith.mulf %16, %20 : vector<16x32xf32>
    %22 = vector.broadcast %2 : vector<1x32xf32> to vector<16x32xf32>
    %23 = arith.mulf %21, %22 : vector<16x32xf32>
    %24 = vector.broadcast %3 : vector<1x32xf32> to vector<16x32xf32>
    %25 = arith.addf %23, %24 : vector<16x32xf32>
    %26 = arith.truncf %25 : vector<16x32xf32> to vector<16x32xbf16>
    %c0_9 = arith.constant 0 : index
    %c0_10 = arith.constant 0 : index
    %27 = vector.load %arg4[%c0_9, %c0_10] : memref<16x32xbf16, #tpu.memory_space<vmem>>, vector<16x32xbf16>
    tpu.vector_store %arg4[%c0_9, %c0_10], %26 {strides = array<i32>} : memref<16x32xbf16, #tpu.memory_space<vmem>>, vector<16x32xbf16>,
    return
  }
  func.func @transform_0(%arg0: i32) -> (i32, i32) {
    %c0_i32 = arith.constant 0 : i32
    %c0_i32_0 = arith.constant 0 : i32
    return %arg0, %c0_i32 : i32, i32
  }
  func.func @transform_1(%arg0: i32) -> (i32, i32) {
    %c0_i32 = arith.constant 0 : i32
    %c0_i32_0 = arith.constant 0 : i32
    %c0_i32_1 = arith.constant 0 : i32
    return %c0_i32, %c0_i32_0 : i32, i32
  }
  func.func @transform_2(%arg0: i32) -> (i32, i32) {
    %c0_i32 = arith.constant 0 : i32
    %c0_i32_0 = arith.constant 0 : i32
    %c0_i32_1 = arith.constant 0 : i32
    return %c0_i32, %c0_i32_0 : i32, i32
  }
  func.func @transform_3(%arg0: i32) -> (i32, i32) {
    %c0_i32 = arith.constant 0 : i32
    %c0_i32_0 = arith.constant 0 : i32
    return %arg0, %c0_i32 : i32, i32
  }
}

</mosaic_0001>

<bundles_post_ra>
// kernel: tpu_custom_call.1
= control target key start
LH: loop header
LB: loop body
LE: loop exit
PB: predicated region body
PF: predicated region fallthrough
CT: control target
= control target key end

     0   :  { %8 = vsyncpa [#allocation3], 0  ;;  %s237_s0 = inlined_call_operand.hbm [shape: bf16[16,32], index: 0, kind: input, shape index: {}]   ;;  %s238_s1 = inlined_call_operand.vmem [shape: f32[1,32], index: 1, kind: input, shape index: {}]   ;;  %s239_s2 = inlined_call_operand.vmem [shape: f32[1,32], index: 2, kind: input, shape index: {}]   ;;  %s240_s3 = inlined_call_operand.hbm [shape: bf16[16,32], index: 3, kind: output, shape index: {}]  }
   0x1   :  { %9 = vsyncpa [#allocation4], 0  ;;  %s173_s12 = smov [#allocation2]   ;;  %s125_s16 = scalar_lea.hbm %s237_s0, 128 }
   0x2   :  { %s15_s13 = sshll.u32 %s173_s12, 4  ;;  %p126_p0 = scmp.ne.s32.totalorder %s237_s0, %s125_s16  ;;  %s16_s13 = int_to_ptr.vmem [resolvable:$true] %s15_s13 }
   0x3   :  { %p129_p1 = scmp.lt.u32.totalorder %s125_s16, %s237_s0 }
   0x5   :  { %p131_p2 = pnand %p129_p1, %p126_p0 }
   0x7   :  { %134 = shalt.err (!%p131_p2)
}
   0x8   :  { %s135_s21 = scalar_lea.vmem %s16_s13, 128  ;;  %p140_p4 = scmp.lt.s32.totalorder %s16_s13, %s16_s13 }
   0x9   :  { %p136_p3 = scmp.ne.s32.totalorder %s16_s13, %s135_s21  ;;  %p141_p5 = scmp.lt.s32.totalorder %s135_s21, %s135_s21 }
   0xb   :  { %p142_p6 = por %p141_p5, %p140_p4 }
   0xd   :  { %p143_p7 = pnand %p142_p6, %p136_p3 }
   0xf   :  { %146 = shalt.err (!%p143_p7)
}
  0x10   :  { %s174_s22 = smov 64   ;;  %s175_s23 = smov 4  }
  0x11   :  { %21 = dma.hbm_to_vmem [thread:$0]  %s237_s0, 128, %s16_s13, [#allocation3], %s174_s22, %s174_s22, %s175_s23  }
  0x12   :  { %169 = dma.done.wait [#allocation3], 128  }
  0x13   :  { %170 = vsyncadd [#allocation3], 4294967168  ;;  %v114_v0 = vld [vmem:[#allocation2] sm:$0xff]   ;;  %vm35_vm0 = vcmask 261120   ;;  %vm87_vm1 = vcmask 257024   ;;  %s176_s29 = smov [#allocation5]  }
  0x14   :  { %v115_v1 = vunpack.c.l.bf16 %v114_v0  ;;  %v116_v2 = vunpack.c.h.bf16 %v114_v0  ;;  %v107_v22 = vld [vmem:[%s238_s1] ss:$0 sm:$0xff]  ;;  %s95_s30 = sshll.u32 %s176_s29, 4  ;;  %s96_s30 = int_to_ptr.vmem [resolvable:$true] %s95_s30 }
  0x15   :  { %v108_v24 = vld [vmem:[%s239_s2] ss:$0 sm:$0xff]  ;;  %s147_s1 = scalar_lea.vmem %s96_s30, 128  ;;  %p152_p9 = scmp.lt.s32.totalorder %s96_s30, %s96_s30 }
  0x16   :  { %v36_v3 = vsel %vm35_vm0, %v115_v1, 0.0  ;;  %v39_v4 = vsel %vm35_vm0, %v116_v2, 0.0  ;;  %p148_p8 = scmp.ne.s32.totalorder %s96_s30, %s147_s1  ;;  %p153_p10 = scmp.lt.s32.totalorder %s147_s1, %s147_s1 }
  0x17   :  { %37 = vadd.xlane.f32.xlu0 %v36_v3 }
  0x18   :  { %p154_p11 = por %p153_p10, %p152_p9 }
  0x1a   :  { %p155_p12 = pnand %p154_p11, %p148_p8 }
  0x1b   :  { %40 = vadd.xlane.f32.xlu0 %v39_v4 }
  0xa4   :  { %v38_v5 = vpop.xlane.xlu0 %37 }
  0xa5   :  { %v43_v6 = vmul.f32 0.03125, %v38_v5 }
  0xa7   :  { %v45_v7 = vsub.f32 %v115_v1, %v43_v6 }
  0xa8   :  { %v41_v8 = vpop.xlane.xlu0 %40 }
  0xa9   :  { %v44_v9 = vmul.f32 0.03125, %v41_v8  ;;  %v47_v10 = vmul.f32 %v45_v7, %v45_v7 }
  0xab   :  { %v46_v11 = vsub.f32 %v116_v2, %v44_v9  ;;  %v49_v12 = vsel %vm35_vm0, %v47_v10, 0.0 }
  0xac   :  { %50 = vadd.xlane.f32.xlu1 %v49_v12 }
  0xad   :  { %v48_v13 = vmul.f32 %v46_v11, %v46_v11 }
  0xaf   :  { %v52_v14 = vsel %vm35_vm0, %v48_v13, 0.0 }
  0xb0   :  { %53 = vadd.xlane.f32.xlu1 %v52_v14 }
 0x139   :  { %v51_v15 = vpop.xlane.xlu1 %50 }
 0x13a   :  { %v55_v16 = vmul.f32 0.03125, %v51_v15 }
 0x13c   :  { %v57_v17 = vadd.f32 1e-05, %v55_v16 }
 0x13d   :  { %v54_v18 = vpop.xlane.xlu1 %53 }
 0x13e   :  { %121 = vrsqrt.f32 %v57_v17  ;;  %v56_v19 = vmul.f32 0.03125, %v54_v18 }
 0x140   :  { %v58_v20 = vadd.f32 1e-05, %v56_v19 }
 0x142   :  { %123 = vrsqrt.f32 %v58_v20 }
 0x148   :  { %v122_v21 = vpop.eup %121 }
 0x149   :  { %v61_v23 = vmul.f32 %v122_v21, %v45_v7 }
 0x14b   :  { %v69_v25 = vmul.f32 %v107_v22, %v61_v23 }
 0x14c   :  { %v124_v26 = vpop.eup %123 }
 0x14d   :  { %v62_v27 = vmul.f32 %v124_v26, %v46_v11  ;;  %v77_v28 = vadd.f32 %v108_v24, %v69_v25 }
 0x14f   :  { %v70_v29 = vmul.f32 %v107_v22, %v62_v27  ;;  %v111_v30 = vpack.c.bf16 %v77_v28, %v77_v28 }
 0x151   :  { %v78_v31 = vadd.f32 %v108_v24, %v70_v29  ;;  %88 = vst.msk [vmem:[#allocation5] sm:$0xf] %vm87_vm1, %v111_v30 }
 0x153   :  { %v112_v32 = vpack.c.bf16 %v78_v31, %v78_v31 }
 0x155   :  { %89 = vst.msk [vmem:[#allocation5 + $0x4] sm:$0xf] %vm87_vm1, %v112_v32 }
 0x156   :  { %158 = shalt.err (!%p155_p12)
}
 0x157   :  { %s159_s5 = scalar_lea.hbm %s240_s3, 128 }
 0x158   :  { %p160_p13 = scmp.ne.s32.totalorder %s240_s3, %s159_s5  ;;  %p163_p0 = scmp.lt.u32.totalorder %s159_s5, %s240_s3 }
 0x15a   :  { %p165_p1 = pnand %p163_p0, %p160_p13 }
 0x15c   :  { %168 = shalt.err (!%p165_p1)
}
 0x15d   :  { %101 = dma.vmem_to_hbm [thread:$0]  %s96_s30, 128, %s240_s3, [#allocation4], %s174_s22, %s174_s22, %s175_s23  }
 0x15e   :  { %171 = dma.done.wait [#allocation4], 128  }
 0x15f   :  { %172 = vsyncadd [#allocation4], 4294967168 }
 0x160   :  { %105 = vsyncpa [#allocation3], 1 }
 0x161   :  { %106 = vsyncpa [#allocation4], 1 }

</bundles_post_ra>
